<compile_context>
chip_gen: v5e
topology: v5e:2x2
jax: 0.10.0
libtpu: 0.0.40
codegen_flags: <defaults>
</compile_context>

<pallas_src>
import functools

import jax
import jax.numpy as jnp
from jax.experimental import pallas as pl
from jax.experimental.pallas import tpu as pltpu

LANES = 128
DEFAULT_BLOCK_ROWS = 1024   # 1024x128 f32 = 512 KiB per input per buffer; 2 MiB total double-buffered
NUM_SHARDS = 2              # megacore split on v7x; serialized (harmless) on v5e / v6e


def _round_up(x, m):
    return ((x + m - 1) // m) * m


def _bce_sums_kernel(logit_ref, mask_ref, out_ref, *,
                     n_valid, block_rows, blocks_per_shard):
    c = pl.program_id(0)   # core shard
    i = pl.program_id(1)   # block within shard (reduction axis)

    @pl.when(i == 0)
    def _init():
        out_ref[...] = jnp.zeros_like(out_ref)

    x = logit_ref[...].astype(jnp.float32)
    m = mask_ref[...].astype(jnp.float32)

    # Global element index of every lane in this block; masks the ragged tail and any
    # duplicated (clamped) blocks of the last shard.
    # TODO(synk): int32 index math limits inputs to < 2^31 elements (fine for segmentation maps).
    blk = c * blocks_per_shard + i
    row = jax.lax.broadcasted_iota(jnp.int32, x.shape, 0)
    lane = jax.lax.broadcasted_iota(jnp.int32, x.shape, 1)
    gidx = (blk * block_rows + row) * LANES + lane
    valid = gidx < n_valid

    pos = valid & (m == 1.0)
    neg = valid & (m == 0.0)
    ign = valid & (m > 1.0)

    # mask_rsp[ign_index] = 0 in the reference module
    y = jnp.where(m > 1.0, 0.0, m)

    # Numerically stable BCE-with-logits (same formula PyTorch uses):
    #   max(x, 0) - x*y + log(1 + exp(-|x|))
    bce = jnp.maximum(x, 0.0) - x * y + jnp.log1p(jnp.exp(-jnp.abs(x)))

    def rsum(v):
        # (block_rows, 128) -> (block_rows//8, 8, 128): groups map exactly onto vregs, so the
        # reshape is free and the reduction is pure VALU adds (no per-step XLU sublane reduce).
        return jnp.sum(v.reshape(block_rows // 8, 8, LANES), axis=0)

    out_ref[0, 0] += rsum(jnp.where(pos, bce, 0.0))
    out_ref[0, 1] += rsum(jnp.where(neg, bce, 0.0))
    out_ref[0, 2] += rsum(jnp.where(ign, bce, 0.0))
    out_ref[0, 3] += rsum(pos.astype(jnp.float32))
    out_ref[0, 4] += rsum(neg.astype(jnp.float32))


def _run_sums(lg_flat, mk_flat):
    n_valid = lg_flat.shape[0]

    # Lane pad only when needed (no-op for typical shapes where numel % 128 == 0).
    rem = n_valid % LANES
    if rem:
        pad = LANES - rem
        lg_flat = jnp.pad(lg_flat, (0, pad))
        mk_flat = jnp.pad(mk_flat, (0, pad))

    lg2d = lg_flat.reshape(-1, LANES)
    mk2d = mk_flat.reshape(-1, LANES)
    n_rows = lg2d.shape[0]

    block_rows = min(DEFAULT_BLOCK_ROWS, _round_up(n_rows, 8))
    total_blocks = pl.cdiv(n_rows, block_rows)
    n_shards = min(NUM_SHARDS, total_blocks)
    blocks_per_shard = pl.cdiv(total_blocks, n_shards)

    def in_map(c, i):
        blk = c * blocks_per_shard + i
        # Clamp so the (possibly shorter) last shard never DMAs out of bounds; the clamped
        # duplicate blocks contribute nothing because their gidx >= n_valid in-kernel.
        return (jnp.minimum(blk, total_blocks - 1), 0)

    kernel = functools.partial(
        _bce_sums_kernel,
        n_valid=n_valid,
        block_rows=block_rows,
        blocks_per_shard=blocks_per_shard,
    )

    sums = pl.pallas_call(
        kernel,
        out_shape=jax.ShapeDtypeStruct((n_shards, 5, 8, LANES), jnp.float32),
        grid=(n_shards, blocks_per_shard),
        in_specs=[
            pl.BlockSpec((block_rows, LANES), in_map),
            pl.BlockSpec((block_rows, LANES), in_map),
        ],
        out_specs=pl.BlockSpec((1, 5, 8, LANES), lambda c, i: (c, 0, 0, 0)),
        compiler_params=pltpu.CompilerParams(
            dimension_semantics=("parallel", "arbitrary")),
    )(lg2d, mk2d)

    # Tiny epilogue: collapse shards + sublanes + lanes (5 scalars total).
    totals = jnp.sum(sums, axis=(0, 2, 3))
    return totals[0], totals[1], totals[2], totals[3], totals[4]


@functools.partial(
    jax.jit,
    static_argnames=("batch_weight", "size_average", "batch_average"))
def binary_cross_entropy_2d(logit, mask, custom_weight=None,
                            batch_weight=False, size_average=True,
                            batch_average=True):
    """JAX/Pallas port of BinaryCrossEntropy2D.forward.

    logit, mask: (n, h, w) or (n, c, h, w) arrays of the same shape.
    custom_weight: optional length-2 array [w_neg, w_pos].
    """
    assert logit.ndim == mask.ndim
    if logit.ndim == 4:
        n, c, h, w = logit.shape
    elif logit.ndim == 3:
        n, h, w = logit.shape
    else:
        raise AttributeError(
            "Expect `logit` is a 3-D or 4-D Tensor, but {}-D instead".format(
                logit.ndim))

    # The PyTorch module flattens in NHWC order; the loss is a pure elementwise sum, so
    # flattening the contiguous NCHW buffer directly gives the identical result without the
    # extra transpose pass over HBM.
    lg = logit.reshape(-1)
    mk = mask.reshape(-1)

    s_pos, s_neg, s_ign, n_pos, n_neg = _run_sums(lg, mk)

    if custom_weight is not None:
        # NOTE: the original PyTorch code references `self.weight` here (a bug);
        # we use the stored custom_weight values as documented: [w_neg, w_pos].
        cw = jnp.asarray(custom_weight, jnp.float32)
        loss = cw[1] * s_pos + cw[0] * s_neg
    elif batch_weight:
        sum_num = n_pos + n_neg
        # TODO(synk): the PyTorch path raises if sum_num == 0; no clean in-kernel equivalent
        # for a host-side exception, so guard the division instead (loss becomes 0).
        safe = jnp.maximum(sum_num, 1.0)
        w_pos = jnp.where(n_pos > 0, 1.0 + n_neg / safe, 1.0)
        w_neg = jnp.where(n_neg > 0, 1.0 + n_pos / safe, 1.0)
        loss = w_pos * s_pos + w_neg * s_neg
    else:
        # weight=None: ignored pixels still contribute with target forced to 0,
        # exactly as in the reference (mask_rsp[ign_index] = 0, no weighting).
        loss = s_pos + s_neg + s_ign

    if size_average:
        loss = loss / (h * w)
    if batch_average:
        loss = loss / n
    return loss


# ----------------------------------------------------------------------------
# Pure-JAX references for sanity checking.
# ----------------------------------------------------------------------------
def _bce_elem(lg, mk):
    y = jnp.where(mk > 1.0, 0.0, mk)
    return jnp.maximum(lg, 0.0) - lg * y + jnp.log1p(jnp.exp(-jnp.abs(lg)))


def _reference_loss(logit, mask, size_average=True, batch_average=True):
    n = logit.shape[0]
    h, w = logit.shape[-2], logit.shape[-1]
    lg = logit.reshape(-1).astype(jnp.float32)
    mk = mask.reshape(-1).astype(jnp.float32)
    loss = jnp.sum(_bce_elem(lg, mk))
    if size_average:
        loss = loss / (h * w)
    if batch_average:
        loss = loss / n
    return loss


def _reference_loss_batch_weight(logit, mask, size_average=True,
                                 batch_average=True):
    n = logit.shape[0]
    h, w = logit.shape[-2], logit.shape[-1]
    lg = logit.reshape(-1).astype(jnp.float32)
    mk = mask.reshape(-1).astype(jnp.float32)
    pos = mk == 1.0
    neg = mk == 0.0
    n_pos = jnp.sum(pos)
    n_neg = jnp.sum(neg)
    s = n_pos + n_neg
    w_pos = jnp.where(n_pos > 0, 1.0 + n_neg / s, 1.0)
    w_neg = jnp.where(n_neg > 0, 1.0 + n_pos / s, 1.0)
    weight = jnp.where(pos, w_pos, jnp.where(neg, w_neg, 0.0))
    loss = jnp.sum(weight * _bce_elem(lg, mk))
    if size_average:
        loss = loss / (h * w)
    if batch_average:
        loss = loss / n
    return loss


if __name__ == "__main__":
    key = jax.random.PRNGKey(0)
    k1, k2, k3 = jax.random.split(key, 3)

    n, c, h, w = 2, 4, 16, 16
    logit = jax.random.normal(k1, (n, c, h, w), dtype=jnp.float32)

    # mask of 0/1 with ~10% ignore_index (255) pixels
    u = jax.random.uniform(k2, (n, c, h, w))
    mask = (u < 0.5).astype(jnp.float32)
    ign = jax.random.uniform(k3, (n, c, h, w)) > 0.9
    mask = jnp.where(ign, 255.0, mask)

    # default config: custom_weight=None, batch_weight=False
    loss = jax.block_until_ready(binary_cross_entropy_2d(logit, mask))
    ref = jax.block_until_ready(_reference_loss(logit, mask))
    assert jnp.allclose(loss, ref, rtol=1e-5, atol=1e-5), (loss, ref)

    # batch_weight path
    loss_bw = jax.block_until_ready(
        binary_cross_entropy_2d(logit, mask, batch_weight=True))
    ref_bw = jax.block_until_ready(_reference_loss_batch_weight(logit, mask))
    assert jnp.allclose(loss_bw, ref_bw, rtol=1e-5, atol=1e-5), (loss_bw, ref_bw)

    # custom_weight path
    cw = jnp.asarray([0.3, 0.7], jnp.float32)
    loss_cw = jax.block_until_ready(
        binary_cross_entropy_2d(logit, mask, custom_weight=cw))
    assert jnp.isfinite(loss_cw)

    print("KERNEL_OK")
</pallas_src>

<mosaic_0001>
module attributes {stable_mosaic.version = 11 : i64} {
  func.func @_bce_sums_kernel(%arg0: i32, %arg1: i32, %arg2: memref<16x128xf32, #tpu.memory_space<vmem>>, %arg3: memref<16x128xf32, #tpu.memory_space<vmem>>, %arg4: memref<1x5x8x128xf32, #tpu.memory_space<vmem>>) attributes {dimension_semantics = [#tpu.dimension_semantics<parallel>, #tpu.dimension_semantics<arbitrary>], iteration_bounds = array<i64: 1, 1>, scalar_prefetch = 0 : i64, scratch_operands = 0 : i64, tpu.core_type = #tpu.core_type<tc>, window_params = [{transform_indices = @transform_0, window_bounds = array<i64: 16, 128>}, {transform_indices = @transform_1, window_bounds = array<i64: 16, 128>}, {transform_indices = @transform_2, window_bounds = array<i64: 1, 5, 8, 128>}]} {
    %c0_i32 = arith.constant 0 : i32
    %0 = arith.cmpi eq, %arg1, %c0_i32 : i32
    %1 = arith.extui %0 : i1 to i32
    %c0_i32_0 = arith.constant 0 : i32
    %2 = arith.cmpi ne, %1, %c0_i32_0 : i32
    scf.if %2 {
      %cst_54 = arith.constant 0.000000e+00 : f32
      %90 = vector.broadcast %cst_54 : f32 to vector<1x5x8x128xf32>
      %c0_55 = arith.constant 0 : index
      %c0_56 = arith.constant 0 : index
      %c0_57 = arith.constant 0 : index
      %c0_58 = arith.constant 0 : index
      %91 = vector.load %arg4[%c0_55, %c0_56, %c0_57, %c0_58] : memref<1x5x8x128xf32, #tpu.memory_space<vmem>>, vector<1x5x8x128xf32>
      tpu.vector_store %arg4[%c0_55, %c0_56, %c0_57, %c0_58], %90 {strides = array<i32>} : memref<1x5x8x128xf32, #tpu.memory_space<vmem>>, vector<1x5x8x128xf32>,
    } else {
    }
    %c0 = arith.constant 0 : index
    %c0_1 = arith.constant 0 : index
    %3 = vector.load %arg2[%c0, %c0_1] : memref<16x128xf32, #tpu.memory_space<vmem>>, vector<16x128xf32>
    %c0_2 = arith.constant 0 : index
    %c0_3 = arith.constant 0 : index
    %4 = vector.load %arg3[%c0_2, %c0_3] : memref<16x128xf32, #tpu.memory_space<vmem>>, vector<16x128xf32>
    %c1_i32 = arith.constant 1 : i32
    %5 = arith.muli %arg0, %c1_i32 : i32
    %6 = arith.addi %5, %arg1 : i32
    %7 = tpu.iota {dimensions = array<i32: 0>} : vector<16x128xi32>
    %8 = tpu.iota {dimensions = array<i32: 1>} : vector<16x128xi32>
    %c16_i32 = arith.constant 16 : i32
    %9 = arith.muli %6, %c16_i32 : i32
    %10 = vector.broadcast %9 : i32 to vector<16x128xi32>
    %11 = arith.addi %10, %7 : vector<16x128xi32>
    %c128_i32 = arith.constant 128 : i32
    %12 = vector.broadcast %c128_i32 : i32 to vector<16x128xi32>
    %13 = arith.muli %11, %12 : vector<16x128xi32>
    %14 = arith.addi %13, %8 : vector<16x128xi32>
    %c2048_i32 = arith.constant 2048 : i32
    %15 = vector.broadcast %c2048_i32 : i32 to vector<16x128xi32>
    %16 = arith.cmpi slt, %14, %15 : vector<16x128xi32>
    %cst = arith.constant 1.000000e+00 : f32
    %17 = vector.broadcast %cst : f32 to vector<16x128xf32>
    %18 = arith.cmpf oeq, %4, %17 : vector<16x128xf32>
    %19 = arith.andi %16, %18 : vector<16x128xi1>
    %cst_4 = arith.constant 0.000000e+00 : f32
    %20 = vector.broadcast %cst_4 : f32 to vector<16x128xf32>
    %21 = arith.cmpf oeq, %4, %20 : vector<16x128xf32>
    %22 = arith.andi %16, %21 : vector<16x128xi1>
    %cst_5 = arith.constant 1.000000e+00 : f32
    %23 = vector.broadcast %cst_5 : f32 to vector<16x128xf32>
    %24 = arith.cmpf ogt, %4, %23 : vector<16x128xf32>
    %25 = arith.andi %16, %24 : vector<16x128xi1>
    %cst_6 = arith.constant 1.000000e+00 : f32
    %26 = vector.broadcast %cst_6 : f32 to vector<16x128xf32>
    %27 = arith.cmpf ogt, %4, %26 : vector<16x128xf32>
    %cst_7 = arith.constant 0.000000e+00 : f32
    %28 = vector.broadcast %cst_7 : f32 to vector<16x128xf32>
    %29 = arith.select %27, %28, %4 : vector<16x128xi1>, vector<16x128xf32>
    %cst_8 = arith.constant 0.000000e+00 : f32
    %30 = vector.broadcast %cst_8 : f32 to vector<16x128xf32>
    %31 = arith.maximumf %3, %30 : vector<16x128xf32>
    %32 = arith.mulf %3, %29 : vector<16x128xf32>
    %33 = arith.subf %31, %32 : vector<16x128xf32>
    %34 = math.absf %3 : vector<16x128xf32>
    %cst_9 = arith.constant 0.000000e+00 : f32
    %35 = vector.broadcast %cst_9 : f32 to vector<16x128xf32>
    %36 = arith.subf %35, %34 : vector<16x128xf32>
    %37 = math.exp %36 : vector<16x128xf32>
    %38 = math.log1p %37 : vector<16x128xf32>
    %39 = arith.addf %33, %38 : vector<16x128xf32>
    %c0_10 = arith.constant 0 : index
    %c0_11 = arith.constant 0 : index
    %c0_12 = arith.constant 0 : index
    %c0_13 = arith.constant 0 : index
    %40 = vector.load %arg4[%c0_10, %c0_11, %c0_12, %c0_13] : memref<1x5x8x128xf32, #tpu.memory_space<vmem>>, vector<1x1x8x128xf32>
    %41 = vector.shape_cast %40 : vector<1x1x8x128xf32> to vector<8x128xf32>
    %cst_14 = arith.constant 0.000000e+00 : f32
    %42 = vector.broadcast %cst_14 : f32 to vector<16x128xf32>
    %43 = arith.select %19, %39, %42 : vector<16x128xi1>, vector<16x128xf32>
    %44 = vector.shape_cast %43 : vector<16x128xf32> to vector<2x8x128xf32>
    %cst_15 = arith.constant dense<0.000000e+00> : vector<8x128xf32>
    %45 = vector.multi_reduction <add>, %44, %cst_15 [0] : vector<2x8x128xf32> to vector<8x128xf32>
    %46 = arith.addf %41, %45 : vector<8x128xf32>
    %c0_16 = arith.constant 0 : index
    %c0_17 = arith.constant 0 : index
    %c0_18 = arith.constant 0 : index
    %c0_19 = arith.constant 0 : index
    %47 = vector.load %arg4[%c0_16, %c0_17, %c0_18, %c0_19] : memref<1x5x8x128xf32, #tpu.memory_space<vmem>>, vector<1x1x8x128xf32>
    %48 = vector.shape_cast %47 : vector<1x1x8x128xf32> to vector<8x128xf32>
    %49 = vector.shape_cast %46 : vector<8x128xf32> to vector<1x1x8x128xf32>
    tpu.vector_store %arg4[%c0_16, %c0_17, %c0_18, %c0_19], %49 {strides = array<i32>} : memref<1x5x8x128xf32, #tpu.memory_space<vmem>>, vector<1x1x8x128xf32>,
    %c0_20 = arith.constant 0 : index
    %c1 = arith.constant 1 : index
    %c0_21 = arith.constant 0 : index
    %c0_22 = arith.constant 0 : index
    %50 = vector.load %arg4[%c0_20, %c1, %c0_21, %c0_22] : memref<1x5x8x128xf32, #tpu.memory_space<vmem>>, vector<1x1x8x128xf32>
    %51 = vector.shape_cast %50 : vector<1x1x8x128xf32> to vector<8x128xf32>
    %cst_23 = arith.constant 0.000000e+00 : f32
    %52 = vector.broadcast %cst_23 : f32 to vector<16x128xf32>
    %53 = arith.select %22, %39, %52 : vector<16x128xi1>, vector<16x128xf32>
    %54 = vector.shape_cast %53 : vector<16x128xf32> to vector<2x8x128xf32>
    %cst_24 = arith.constant dense<0.000000e+00> : vector<8x128xf32>
    %55 = vector.multi_reduction <add>, %54, %cst_24 [0] : vector<2x8x128xf32> to vector<8x128xf32>
    %56 = arith.addf %51, %55 : vector<8x128xf32>
    %c0_25 = arith.constant 0 : index
    %c1_26 = arith.constant 1 : index
    %c0_27 = arith.constant 0 : index
    %c0_28 = arith.constant 0 : index
    %57 = vector.load %arg4[%c0_25, %c1_26, %c0_27, %c0_28] : memref<1x5x8x128xf32, #tpu.memory_space<vmem>>, vector<1x1x8x128xf32>
    %58 = vector.shape_cast %57 : vector<1x1x8x128xf32> to vector<8x128xf32>
    %59 = vector.shape_cast %56 : vector<8x128xf32> to vector<1x1x8x128xf32>
    tpu.vector_store %arg4[%c0_25, %c1_26, %c0_27, %c0_28], %59 {strides = array<i32>} : memref<1x5x8x128xf32, #tpu.memory_space<vmem>>, vector<1x1x8x128xf32>,
    %c0_29 = arith.constant 0 : index
    %c2 = arith.constant 2 : index
    %c0_30 = arith.constant 0 : index
    %c0_31 = arith.constant 0 : index
    %60 = vector.load %arg4[%c0_29, %c2, %c0_30, %c0_31] : memref<1x5x8x128xf32, #tpu.memory_space<vmem>>, vector<1x1x8x128xf32>
    %61 = vector.shape_cast %60 : vector<1x1x8x128xf32> to vector<8x128xf32>
    %cst_32 = arith.constant 0.000000e+00 : f32
    %62 = vector.broadcast %cst_32 : f32 to vector<16x128xf32>
    %63 = arith.select %25, %39, %62 : vector<16x128xi1>, vector<16x128xf32>
    %64 = vector.shape_cast %63 : vector<16x128xf32> to vector<2x8x128xf32>
    %cst_33 = arith.constant dense<0.000000e+00> : vector<8x128xf32>
    %65 = vector.multi_reduction <add>, %64, %cst_33 [0] : vector<2x8x128xf32> to vector<8x128xf32>
    %66 = arith.addf %61, %65 : vector<8x128xf32>
    %c0_34 = arith.constant 0 : index
    %c2_35 = arith.constant 2 : index
    %c0_36 = arith.constant 0 : index
    %c0_37 = arith.constant 0 : index
    %67 = vector.load %arg4[%c0_34, %c2_35, %c0_36, %c0_37] : memref<1x5x8x128xf32, #tpu.memory_space<vmem>>, vector<1x1x8x128xf32>
    %68 = vector.shape_cast %67 : vector<1x1x8x128xf32> to vector<8x128xf32>
    %69 = vector.shape_cast %66 : vector<8x128xf32> to vector<1x1x8x128xf32>
    tpu.vector_store %arg4[%c0_34, %c2_35, %c0_36, %c0_37], %69 {strides = array<i32>} : memref<1x5x8x128xf32, #tpu.memory_space<vmem>>, vector<1x1x8x128xf32>,
    %c0_38 = arith.constant 0 : index
    %c3 = arith.constant 3 : index
    %c0_39 = arith.constant 0 : index
    %c0_40 = arith.constant 0 : index
    %70 = vector.load %arg4[%c0_38, %c3, %c0_39, %c0_40] : memref<1x5x8x128xf32, #tpu.memory_space<vmem>>, vector<1x1x8x128xf32>
    %71 = vector.shape_cast %70 : vector<1x1x8x128xf32> to vector<8x128xf32>
    %72 = arith.extui %19 : vector<16x128xi1> to vector<16x128xi32>
    %73 = arith.sitofp %72 : vector<16x128xi32> to vector<16x128xf32>
    %74 = vector.shape_cast %73 : vector<16x128xf32> to vector<2x8x128xf32>
    %cst_41 = arith.constant dense<0.000000e+00> : vector<8x128xf32>
    %75 = vector.multi_reduction <add>, %74, %cst_41 [0] : vector<2x8x128xf32> to vector<8x128xf32>
    %76 = arith.addf %71, %75 : vector<8x128xf32>
    %c0_42 = arith.constant 0 : index
    %c3_43 = arith.constant 3 : index
    %c0_44 = arith.constant 0 : index
    %c0_45 = arith.constant 0 : index
    %77 = vector.load %arg4[%c0_42, %c3_43, %c0_44, %c0_45] : memref<1x5x8x128xf32, #tpu.memory_space<vmem>>, vector<1x1x8x128xf32>
    %78 = vector.shape_cast %77 : vector<1x1x8x128xf32> to vector<8x128xf32>
    %79 = vector.shape_cast %76 : vector<8x128xf32> to vector<1x1x8x128xf32>
    tpu.vector_store %arg4[%c0_42, %c3_43, %c0_44, %c0_45], %79 {strides = array<i32>} : memref<1x5x8x128xf32, #tpu.memory_space<vmem>>, vector<1x1x8x128xf32>,
    %c0_46 = arith.constant 0 : index
    %c4 = arith.constant 4 : index
    %c0_47 = arith.constant 0 : index
    %c0_48 = arith.constant 0 : index
    %80 = vector.load %arg4[%c0_46, %c4, %c0_47, %c0_48] : memref<1x5x8x128xf32, #tpu.memory_space<vmem>>, vector<1x1x8x128xf32>
    %81 = vector.shape_cast %80 : vector<1x1x8x128xf32> to vector<8x128xf32>
    %82 = arith.extui %22 : vector<16x128xi1> to vector<16x128xi32>
    %83 = arith.sitofp %82 : vector<16x128xi32> to vector<16x128xf32>
    %84 = vector.shape_cast %83 : vector<16x128xf32> to vector<2x8x128xf32>
    %cst_49 = arith.constant dense<0.000000e+00> : vector<8x128xf32>
    %85 = vector.multi_reduction <add>, %84, %cst_49 [0] : vector<2x8x128xf32> to vector<8x128xf32>
    %86 = arith.addf %81, %85 : vector<8x128xf32>
    %c0_50 = arith.constant 0 : index
    %c4_51 = arith.constant 4 : index
    %c0_52 = arith.constant 0 : index
    %c0_53 = arith.constant 0 : index
    %87 = vector.load %arg4[%c0_50, %c4_51, %c0_52, %c0_53] : memref<1x5x8x128xf32, #tpu.memory_space<vmem>>, vector<1x1x8x128xf32>
    %88 = vector.shape_cast %87 : vector<1x1x8x128xf32> to vector<8x128xf32>
    %89 = vector.shape_cast %86 : vector<8x128xf32> to vector<1x1x8x128xf32>
    tpu.vector_store %arg4[%c0_50, %c4_51, %c0_52, %c0_53], %89 {strides = array<i32>} : memref<1x5x8x128xf32, #tpu.memory_space<vmem>>, vector<1x1x8x128xf32>,
    return
  }
  func.func @transform_0(%arg0: i32, %arg1: i32) -> (i32, i32) {
    %c1_i32 = arith.constant 1 : i32
    %0 = arith.muli %arg0, %c1_i32 : i32
    %1 = arith.addi %0, %arg1 : i32
    %c0_i32 = arith.constant 0 : i32
    %2 = arith.minsi %1, %c0_i32 : i32
    %c0_i32_0 = arith.constant 0 : i32
    %c0_i32_1 = arith.constant 0 : i32
    return %2, %c0_i32_0 : i32, i32
  }
  func.func @transform_1(%arg0: i32, %arg1: i32) -> (i32, i32) {
    %c1_i32 = arith.constant 1 : i32
    %0 = arith.muli %arg0, %c1_i32 : i32
    %1 = arith.addi %0, %arg1 : i32
    %c0_i32 = arith.constant 0 : i32
    %2 = arith.minsi %1, %c0_i32 : i32
    %c0_i32_0 = arith.constant 0 : i32
    %c0_i32_1 = arith.constant 0 : i32
    return %2, %c0_i32_0 : i32, i32
  }
  func.func @transform_2(%arg0: i32, %arg1: i32) -> (i32, i32, i32, i32) {
    %c0_i32 = arith.constant 0 : i32
    %c0_i32_0 = arith.constant 0 : i32
    %c0_i32_1 = arith.constant 0 : i32
    %c0_i32_2 = arith.constant 0 : i32
    return %arg0, %c0_i32, %c0_i32_0, %c0_i32_1 : i32, i32, i32, i32
  }
}

</mosaic_0001>

<bundles_post_ra>
// kernel: binary_cross_entropy_2d.1
= control target key start
LH: loop header
LB: loop body
LE: loop exit
PB: predicated region body
PF: predicated region fallthrough
CT: control target
= control target key end

     0   :  { %v89_v0 = vlaneseq  ;;  %v227_v20 = vmov 0.0   ;;  %s325_s0 = inlined_call_operand.vmem [shape: f32[16,128], index: 0, kind: input, shape index: {}]   ;;  %s326_s1 = inlined_call_operand.vmem [shape: f32[16,128], index: 1, kind: input, shape index: {}]   ;;  %s327_s2 = inlined_call_operand.vmem [shape: f32[1,5,8,128], index: 2, kind: output, shape index: {}]  }
   0x1   :  { %v84_v1 = vld [vmem:[%s325_s0] sm:$0xff]  ;;  %v249_v2 = vld [vmem:[%s325_s0 + $0x8] sm:$0xff] }
   0x2   :  { %v90_v3 = vshrl.u32 %v89_v0, 7  ;;  %v93_v4 = vand.u32 127, %v89_v0  ;;  %v254_v7 = vld [vmem:[%s326_s1] sm:$0xff]  ;;  %v124_v8 = vand.u32 2147483647, %v84_v1  ;;  %v87_v12 = vld [vmem:[%s326_s1 + $0x8] sm:$0xff] }
   0x3   :  { %v125_v9 = vand.u32 2147483647, %v249_v2  ;;  %vm104_vm0 = vcmp.eq.f32.partialorder %v254_v7, 1.0  ;;  %vm108_vm1 = vcmp.eq.f32.partialorder %v254_v7, 0.0  ;;  %vm105_vm3 = vcmp.eq.f32.partialorder %v87_v12, 1.0 }
   0x4   :  { %v91_v5 = vadd.s32 8, %v90_v3  ;;  %v98_v6 = vmul.u32 128, %v90_v3  ;;  %v126_v13 = vsub.f32 0.0, %v124_v8  ;;  %vm109_vm5 = vcmp.eq.f32.partialorder %v87_v12, 0.0 }
   0x5   :  { %v127_v14 = vsub.f32 0.0, %v125_v9  ;;  %vm112_vm10 = vcmp.gt.f32.partialorder %v254_v7, 1.0  ;;  %vm113_vm11 = vcmp.gt.f32.partialorder %v87_v12, 1.0  ;;  %v118_v38 = vmax.f32 %v84_v1, 0.0 }
   0x6   :  { %v99_v10 = vmul.u32 128, %v91_v5  ;;  %v100_v11 = vadd.s32 %v98_v6, %v93_v4  ;;  %v128_v17 = vmul.f32 1.442695, %v126_v13  ;;  %v116_v33 = vsel %vm112_vm10, 0.0, %v254_v7 }
   0x7   :  { %v130_v18 = vmul.f32 1.442695, %v127_v14  ;;  %v117_v36 = vsel %vm113_vm11, 0.0, %v87_v12  ;;  %v120_v39 = vmul.f32 %v116_v33, %v84_v1  ;;  %v119_v42 = vmax.f32 %v249_v2, 0.0 }
   0x8   :  { %v101_v15 = vadd.s32 %v99_v10, %v93_v4  ;;  %vm102_vm2 = vcmp.lt.s32.totalorder %v100_v11, 2048  ;;  %219 = vpow2.f32 %v128_v17  ;;  %v121_v43 = vmul.f32 %v117_v36, %v249_v2 }
   0x9   :  { %vm263_vm4 = vmand %vm102_vm2, %vm104_vm0  ;;  %221 = vpow2.f32 %v130_v18  ;;  %v122_v47 = vsub.f32 %v118_v38, %v120_v39 }
   0xa   :  { %vm103_vm6 = vcmp.lt.s32.totalorder %v101_v15, 2048  ;;  %vm268_vm7 = vmand %vm102_vm2, %vm108_vm1  ;;  %v211_v21 = vsel %vm263_vm4, 1.0, %v227_v20  ;;  %v123_v50 = vsub.f32 %v119_v42, %v121_v43 }
   0xb   :  { %vm275_vm8 = vmand %vm103_vm6, %vm105_vm3  ;;  %v215_v23 = vsel %vm268_vm7, 1.0, %v227_v20 }
   0xc   :  { %vm282_vm9 = vmand %vm103_vm6, %vm109_vm5  ;;  %v212_v25 = vsel %vm275_vm8, 1.0, %v227_v20 }
   0xd   :  { %v178_v26 = vadd.f32 %v212_v25, %v211_v21  ;;  %v216_v27 = vsel %vm282_vm9, 1.0, %v227_v20  ;;  %vm114_vm14 = vmand %vm102_vm2, %vm112_vm10 }
   0xe   :  { %v187_v28 = vadd.f32 %v216_v27, %v215_v23  ;;  %v220_v29 = vpop.eup %219  ;;  %vm115_vm15 = vmand %vm103_vm6, %vm113_vm11 }
   0xf   :  { %213 = vst [vmem:[%s327_s2 + $0x18] sm:$0xff] %v178_v26  ;;  %v222_v30 = vpop.eup %221  ;;  %v132_v31 = vadd.f32 1.0, %v220_v29  ;;  %v135_v32 = vmul.f32 -0.5, %v220_v29  ;;  %v138_v40 = vand.u32 2147483647, %v220_v29 }
  0x10   :  { %217 = vst [vmem:[%s327_s2 + $0x20] sm:$0xff] %v187_v28  ;;  %v141_v34 = vadd.f32 1.0, %v222_v30  ;;  %v144_v35 = vmul.f32 -0.5, %v222_v30  ;;  %v147_v44 = vand.u32 2147483647, %v222_v30 }
  0x11   :  { %223 = vlog2.f32 %v132_v31  ;;  %v136_v37 = vadd.f32 1.0, %v135_v32  ;;  %vm139_vm12 = vcmp.lt.f32.partialorder %v138_v40, 0.0004427343 }
  0x12   :  { %225 = vlog2.f32 %v141_v34  ;;  %v145_v41 = vadd.f32 1.0, %v144_v35  ;;  %vm148_vm13 = vcmp.lt.f32.partialorder %v147_v44, 0.0004427343 }
  0x13   :  { %v137_v45 = vmul.f32 %v220_v29, %v136_v37 }
  0x14   :  { %v146_v48 = vmul.f32 %v222_v30, %v145_v41 }
  0x17   :  { %v224_v46 = vpop.eup %223 }
  0x18   :  { %v226_v49 = vpop.eup %225  ;;  %v134_v51 = vmul.f32 0.6931472, %v224_v46 }
  0x19   :  { %v143_v52 = vmul.f32 0.6931472, %v226_v49 }
  0x1a   :  { %v140_v53 = vsel %vm139_vm12, %v137_v45, %v134_v51 }
  0x1b   :  { %v149_v54 = vsel %vm148_vm13, %v146_v48, %v143_v52  ;;  %v150_v55 = vadd.f32 %v140_v53, %v122_v47 }
  0x1c   :  { %v151_v56 = vadd.f32 %v149_v54, %v123_v50 }
  0x1d   :  { %v153_v57 = vsel %vm263_vm4, %v150_v55, 0.0  ;;  %v160_v58 = vsel %vm268_vm7, %v150_v55, 0.0  ;;  %v167_v59 = vsel %vm114_vm14, %v150_v55, 0.0 }
  0x1e   :  { %v154_v60 = vsel %vm275_vm8, %v151_v56, 0.0  ;;  %v161_v61 = vsel %vm282_vm9, %v151_v56, 0.0  ;;  %v168_v62 = vsel %vm115_vm15, %v151_v56, 0.0 }
  0x1f   :  { %v155_v63 = vadd.f32 %v154_v60, %v153_v57  ;;  %v162_v0 = vadd.f32 %v161_v61, %v160_v58  ;;  %v169_v1 = vadd.f32 %v168_v62, %v167_v59 }
  0x21   :  { %157 = vst [vmem:[%s327_s2] sm:$0xff] %v155_v63 }
  0x22   :  { %207 = vst [vmem:[%s327_s2 + $0x8] sm:$0xff] %v162_v0 }
  0x23   :  { %209 = vst [vmem:[%s327_s2 + $0x10] sm:$0xff] %v169_v1 }

</bundles_post_ra>
